<compile_context>
chip_gen: v5e
topology: v5e:2x2
jax: 0.10.0
libtpu: 0.0.40
codegen_flags: <defaults>
</compile_context>

<pallas_src>
import functools

import jax
import jax.numpy as jnp
from jax import lax
from jax.experimental import pallas as pl
from jax.experimental.pallas import tpu as pltpu


def _partial_sums_kernel(pred_ref, targ_ref, mask_x_ref, mask_y_ref, out_ref,
                         *, W, HW):
    """Reduce one (TB, HW) block of flattened images to three partial sums.

    pred_ref / targ_ref   : VMEM (TB, HW) tiles (any float dtype; promoted to f32)
    mask_x_ref / mask_y_ref: VMEM (1, HW) resident {0,1} gradient-validity masks
    out_ref               : (1, 3) f32 partial-sum row owned by this grid step
    """
    d = pred_ref[...].astype(jnp.float32) - targ_ref[...].astype(jnp.float32)

    # Reconstruction term: sum |d|.
    s_rec = jnp.sum(jnp.abs(d))

    # Horizontal gradient: neighbour at flat index j+1 (XLU roll).  Columns at
    # image-row ends (j % W == W-1, which also covers the wrap at j == HW-1)
    # are zeroed by the precomputed mask.
    d_x = pltpu.roll(d, HW - 1, axis=1)           # d_x[:, j] == d[:, (j+1) % HW]
    s_dx = jnp.sum(jnp.abs(d_x - d) * mask_x_ref[...])

    # Vertical gradient: neighbour at flat index j+W.  The last image row
    # (j >= HW-W, which also covers the wrap) is zeroed by the mask.
    d_y = pltpu.roll(d, HW - W, axis=1)           # d_y[:, j] == d[:, (j+W) % HW]
    s_dy = jnp.sum(jnp.abs(d_y - d) * mask_y_ref[...])

    lane = lax.broadcasted_iota(jnp.int32, (1, 3), 1)
    out_ref[...] = jnp.where(lane == 0, s_rec,
                             jnp.where(lane == 1, s_dx, s_dy))


def _choose_batch_tile(BC_pad, HW, elem_bytes, target_bytes):
    """TB divides BC_pad, is a multiple of 8, and gives ~target_bytes blocks."""
    groups = BC_pad // 8                           # BC_pad is a multiple of 8
    want = max(1, int(target_bytes) // (8 * HW * elem_bytes))
    units = int(min(groups, want))
    while groups % units != 0:                     # exact grid, no partial block
        units -= 1
    return units * 8


def _pair_losses(pred, targ, *, target_block_bytes=2 * 1024 * 1024):
    """Returns (rec_loss, detail_loss) for one (pred, target) pair, NCHW."""
    assert pred.shape == targ.shape and pred.ndim == 4
    B, C, H, W = pred.shape
    BC, HW = B * C, H * W

    # Free, contiguous reshape: lane-dense last dim (one flattened image / row).
    p2 = pred.reshape(BC, HW)
    t2 = targ.reshape(BC, HW)

    # Pad the row axis to a multiple of 8; padded rows are zero in both inputs,
    # so their difference (and every sum) is exactly zero.
    BC_pad = ((BC + 7) // 8) * 8
    if BC_pad != BC:
        pad = ((0, BC_pad - BC), (0, 0))
        p2 = jnp.pad(p2, pad)
        t2 = jnp.pad(t2, pad)

    elem_bytes = jnp.dtype(pred.dtype).itemsize
    TB = _choose_batch_tile(BC_pad, HW, elem_bytes, target_block_bytes)
    num_blocks = BC_pad // TB

    # Hoisted gradient-validity masks (computed once per call, resident input).
    lane = jnp.arange(HW, dtype=jnp.int32)
    mask_x = (lane % W != W - 1).astype(jnp.float32).reshape(1, HW)
    mask_y = (lane < HW - W).astype(jnp.float32).reshape(1, HW)

    kernel = functools.partial(_partial_sums_kernel, W=W, HW=HW)

    cost = pl.CostEstimate(
        flops=12 * BC_pad * HW,                     # sub/abs/roll-diff/mask/reduce
        transcendentals=0,
        bytes_accessed=2 * BC_pad * HW * elem_bytes + 2 * HW * 4
        + num_blocks * 3 * 4,
    )

    partials = pl.pallas_call(
        kernel,
        out_shape=jax.ShapeDtypeStruct((num_blocks, 3), jnp.float32),
        grid=(num_blocks,),
        in_specs=[
            pl.BlockSpec((TB, HW), lambda i: (i, 0)),
            pl.BlockSpec((TB, HW), lambda i: (i, 0)),
            pl.BlockSpec((1, HW), lambda i: (0, 0)),   # resident mask_x
            pl.BlockSpec((1, HW), lambda i: (0, 0)),   # resident mask_y
        ],
        out_specs=pl.BlockSpec((1, 3), lambda i: (i, 0)),
        compiler_params=pltpu.CompilerParams(
            dimension_semantics=("parallel",),          # independent partials
            vmem_limit_bytes=32 * 1024 * 1024,
        ),
        cost_estimate=cost,
    )(p2, t2, mask_x, mask_y)

    sums = jnp.sum(partials, axis=0)                    # (3,) f32

    n_all = BC * H * W
    n_dx = BC * H * (W - 1)
    n_dy = BC * (H - 1) * W
    rec_loss = sums[0] / n_all
    detail_loss = sums[1] / n_dx + sums[2] / n_dy
    return rec_loss, detail_loss


@jax.jit
def get_loss(output, out4, label, hr_down2, data_info=None):
    """Pallas implementation of LF-RWKVNet get_loss.forward (two scales)."""
    rec_loss8, detail_loss8 = _pair_losses(output, label)
    loss8 = rec_loss8 + detail_loss8
    rec_loss4, detail_loss4 = _pair_losses(out4, hr_down2)
    loss4 = rec_loss4 + detail_loss4
    return loss8 + loss4


# ---- pure-JAX reference for a correctness check -------------------------------
def _ref_pair(pred, targ):
    d = pred.astype(jnp.float32) - targ.astype(jnp.float32)
    rec = jnp.mean(jnp.abs(d))
    dx = d[:, :, :, 1:] - d[:, :, :, :-1]
    dy = d[:, :, 1:, :] - d[:, :, :-1, :]
    det = jnp.mean(jnp.abs(dx)) + jnp.mean(jnp.abs(dy))
    return rec + det


def _ref_loss(output, out4, label, hr_down2):
    return _ref_pair(output, label) + _ref_pair(out4, hr_down2)


if __name__ == "__main__":
    key = jax.random.PRNGKey(0)
    k1, k2, k3, k4 = jax.random.split(key, 4)

    B, C, H, W = 2, 4, 16, 16          # full-resolution pair
    H2, W2 = H // 2, W // 2            # half-resolution pair

    output = jax.random.normal(k1, (B, C, H, W), dtype=jnp.float32)
    label = jax.random.normal(k2, (B, C, H, W), dtype=jnp.float32)
    out4 = jax.random.normal(k3, (B, C, H2, W2), dtype=jnp.float32)
    hr_down2 = jax.random.normal(k4, (B, C, H2, W2), dtype=jnp.float32)

    loss = jax.block_until_ready(get_loss(output, out4, label, hr_down2))
    ref = jax.block_until_ready(_ref_loss(output, out4, label, hr_down2))

    assert jnp.allclose(loss, ref, rtol=1e-5, atol=1e-5), (loss, ref)
    print("KERNEL_OK")
</pallas_src>

<mosaic_0001>
module attributes {stable_mosaic.version = 11 : i64} {
  func.func @_partial_sums_kernel(%arg0: i32, %arg1: memref<8x256xf32, #tpu.memory_space<vmem>>, %arg2: memref<8x256xf32, #tpu.memory_space<vmem>>, %arg3: memref<1x256xf32, #tpu.memory_space<vmem>>, %arg4: memref<1x256xf32, #tpu.memory_space<vmem>>, %arg5: memref<1x3xf32, #tpu.memory_space<vmem>>) attributes {dimension_semantics = [#tpu.dimension_semantics<parallel>], iteration_bounds = array<i64: 1>, scalar_prefetch = 0 : i64, scratch_operands = 0 : i64, tpu.core_type = #tpu.core_type<tc>, window_params = [{transform_indices = @transform_0, window_bounds = array<i64: 8, 256>}, {transform_indices = @transform_1, window_bounds = array<i64: 8, 256>}, {pipeline_mode = #tpu.pipeline_mode<synchronous>, transform_indices = @transform_2, window_bounds = array<i64: 1, 256>}, {pipeline_mode = #tpu.pipeline_mode<synchronous>, transform_indices = @transform_3, window_bounds = array<i64: 1, 256>}, {transform_indices = @transform_4, window_bounds = array<i64: 1, 3>}]} {
    %c0 = arith.constant 0 : index
    %c0_0 = arith.constant 0 : index
    %0 = vector.load %arg1[%c0, %c0_0] : memref<8x256xf32, #tpu.memory_space<vmem>>, vector<8x256xf32>
    %c0_1 = arith.constant 0 : index
    %c0_2 = arith.constant 0 : index
    %1 = vector.load %arg2[%c0_1, %c0_2] : memref<8x256xf32, #tpu.memory_space<vmem>>, vector<8x256xf32>
    %2 = arith.subf %0, %1 : vector<8x256xf32>
    %3 = math.absf %2 : vector<8x256xf32>
    %4 = vector.shape_cast %3 : vector<8x256xf32> to vector<1x8x256xf32>
    %cst = arith.constant dense<0.000000e+00> : vector<1xf32>
    %5 = vector.multi_reduction <add>, %4, %cst [1, 2] : vector<1x8x256xf32> to vector<1xf32>
    %6 = vector.shape_cast %5 : vector<1xf32> to vector<1x1x1xf32>
    %7 = vector.extract %6[0, 0, 0] : f32 from vector<1x1x1xf32>
    %c255_i32 = arith.constant 255 : i32
    %8 = tpu.dynamic_rotate %2 by %c255_i32 dim 1 : vector<8x256xf32>, i32 -> vector<8x256xf32>
    %9 = arith.subf %8, %2 : vector<8x256xf32>
    %10 = math.absf %9 : vector<8x256xf32>
    %c0_3 = arith.constant 0 : index
    %c0_4 = arith.constant 0 : index
    %11 = vector.load %arg3[%c0_3, %c0_4] : memref<1x256xf32, #tpu.memory_space<vmem>>, vector<1x256xf32>
    %12 = vector.broadcast %11 : vector<1x256xf32> to vector<8x256xf32>
    %13 = arith.mulf %10, %12 : vector<8x256xf32>
    %14 = vector.shape_cast %13 : vector<8x256xf32> to vector<1x8x256xf32>
    %cst_5 = arith.constant dense<0.000000e+00> : vector<1xf32>
    %15 = vector.multi_reduction <add>, %14, %cst_5 [1, 2] : vector<1x8x256xf32> to vector<1xf32>
    %16 = vector.shape_cast %15 : vector<1xf32> to vector<1x1x1xf32>
    %17 = vector.extract %16[0, 0, 0] : f32 from vector<1x1x1xf32>
    %c240_i32 = arith.constant 240 : i32
    %18 = tpu.dynamic_rotate %2 by %c240_i32 dim 1 : vector<8x256xf32>, i32 -> vector<8x256xf32>
    %19 = arith.subf %18, %2 : vector<8x256xf32>
    %20 = math.absf %19 : vector<8x256xf32>
    %c0_6 = arith.constant 0 : index
    %c0_7 = arith.constant 0 : index
    %21 = vector.load %arg4[%c0_6, %c0_7] : memref<1x256xf32, #tpu.memory_space<vmem>>, vector<1x256xf32>
    %22 = vector.broadcast %21 : vector<1x256xf32> to vector<8x256xf32>
    %23 = arith.mulf %20, %22 : vector<8x256xf32>
    %24 = vector.shape_cast %23 : vector<8x256xf32> to vector<1x8x256xf32>
    %cst_8 = arith.constant dense<0.000000e+00> : vector<1xf32>
    %25 = vector.multi_reduction <add>, %24, %cst_8 [1, 2] : vector<1x8x256xf32> to vector<1xf32>
    %26 = vector.shape_cast %25 : vector<1xf32> to vector<1x1x1xf32>
    %27 = vector.extract %26[0, 0, 0] : f32 from vector<1x1x1xf32>
    %28 = tpu.iota {dimensions = array<i32: 1>} : vector<1x3xi32>
    %c0_i32 = arith.constant 0 : i32
    %29 = vector.broadcast %c0_i32 : i32 to vector<1x3xi32>
    %30 = arith.cmpi eq, %28, %29 : vector<1x3xi32>
    %c1_i32 = arith.constant 1 : i32
    %31 = vector.broadcast %c1_i32 : i32 to vector<1x3xi32>
    %32 = arith.cmpi eq, %28, %31 : vector<1x3xi32>
    %33 = vector.broadcast %17 : f32 to vector<1x3xf32>
    %34 = vector.broadcast %27 : f32 to vector<1x3xf32>
    %35 = arith.select %32, %33, %34 : vector<1x3xi1>, vector<1x3xf32>
    %36 = vector.broadcast %7 : f32 to vector<1x3xf32>
    %37 = arith.select %30, %36, %35 : vector<1x3xi1>, vector<1x3xf32>
    %c0_9 = arith.constant 0 : index
    %c0_10 = arith.constant 0 : index
    %38 = vector.load %arg5[%c0_9, %c0_10] : memref<1x3xf32, #tpu.memory_space<vmem>>, vector<1x3xf32>
    tpu.vector_store %arg5[%c0_9, %c0_10], %37 {strides = array<i32>} : memref<1x3xf32, #tpu.memory_space<vmem>>, vector<1x3xf32>,
    return
  }
  func.func @transform_0(%arg0: i32) -> (i32, i32) {
    %c0_i32 = arith.constant 0 : i32
    %c0_i32_0 = arith.constant 0 : i32
    return %arg0, %c0_i32 : i32, i32
  }
  func.func @transform_1(%arg0: i32) -> (i32, i32) {
    %c0_i32 = arith.constant 0 : i32
    %c0_i32_0 = arith.constant 0 : i32
    return %arg0, %c0_i32 : i32, i32
  }
  func.func @transform_2(%arg0: i32) -> (i32, i32) {
    %c0_i32 = arith.constant 0 : i32
    %c0_i32_0 = arith.constant 0 : i32
    %c0_i32_1 = arith.constant 0 : i32
    return %c0_i32, %c0_i32_0 : i32, i32
  }
  func.func @transform_3(%arg0: i32) -> (i32, i32) {
    %c0_i32 = arith.constant 0 : i32
    %c0_i32_0 = arith.constant 0 : i32
    %c0_i32_1 = arith.constant 0 : i32
    return %c0_i32, %c0_i32_0 : i32, i32
  }
  func.func @transform_4(%arg0: i32) -> (i32, i32) {
    %c0_i32 = arith.constant 0 : i32
    %c0_i32_0 = arith.constant 0 : i32
    return %arg0, %c0_i32 : i32, i32
  }
}

module attributes {stable_mosaic.version = 11 : i64} {
  func.func @_partial_sums_kernel(%arg0: i32, %arg1: memref<8x64xf32, #tpu.memory_space<vmem>>, %arg2: memref<8x64xf32, #tpu.memory_space<vmem>>, %arg3: memref<1x64xf32, #tpu.memory_space<vmem>>, %arg4: memref<1x64xf32, #tpu.memory_space<vmem>>, %arg5: memref<1x3xf32, #tpu.memory_space<vmem>>) attributes {dimension_semantics = [#tpu.dimension_semantics<parallel>], iteration_bounds = array<i64: 1>, scalar_prefetch = 0 : i64, scratch_operands = 0 : i64, tpu.core_type = #tpu.core_type<tc>, window_params = [{transform_indices = @transform_0, window_bounds = array<i64: 8, 64>}, {transform_indices = @transform_1, window_bounds = array<i64: 8, 64>}, {pipeline_mode = #tpu.pipeline_mode<synchronous>, transform_indices = @transform_2, window_bounds = array<i64: 1, 64>}, {pipeline_mode = #tpu.pipeline_mode<synchronous>, transform_indices = @transform_3, window_bounds = array<i64: 1, 64>}, {transform_indices = @transform_4, window_bounds = array<i64: 1, 3>}]} {
    %c0 = arith.constant 0 : index
    %c0_0 = arith.constant 0 : index
    %0 = vector.load %arg1[%c0, %c0_0] : memref<8x64xf32, #tpu.memory_space<vmem>>, vector<8x64xf32>
    %c0_1 = arith.constant 0 : index
    %c0_2 = arith.constant 0 : index
    %1 = vector.load %arg2[%c0_1, %c0_2] : memref<8x64xf32, #tpu.memory_space<vmem>>, vector<8x64xf32>
    %2 = arith.subf %0, %1 : vector<8x64xf32>
    %3 = math.absf %2 : vector<8x64xf32>
    %4 = vector.shape_cast %3 : vector<8x64xf32> to vector<1x8x64xf32>
    %cst = arith.constant dense<0.000000e+00> : vector<1xf32>
    %5 = vector.multi_reduction <add>, %4, %cst [1, 2] : vector<1x8x64xf32> to vector<1xf32>
    %6 = vector.shape_cast %5 : vector<1xf32> to vector<1x1x1xf32>
    %7 = vector.extract %6[0, 0, 0] : f32 from vector<1x1x1xf32>
    %c63_i32 = arith.constant 63 : i32
    %8 = tpu.dynamic_rotate %2 by %c63_i32 dim 1 : vector<8x64xf32>, i32 -> vector<8x64xf32>
    %9 = arith.subf %8, %2 : vector<8x64xf32>
    %10 = math.absf %9 : vector<8x64xf32>
    %c0_3 = arith.constant 0 : index
    %c0_4 = arith.constant 0 : index
    %11 = vector.load %arg3[%c0_3, %c0_4] : memref<1x64xf32, #tpu.memory_space<vmem>>, vector<1x64xf32>
    %12 = vector.broadcast %11 : vector<1x64xf32> to vector<8x64xf32>
    %13 = arith.mulf %10, %12 : vector<8x64xf32>
    %14 = vector.shape_cast %13 : vector<8x64xf32> to vector<1x8x64xf32>
    %cst_5 = arith.constant dense<0.000000e+00> : vector<1xf32>
    %15 = vector.multi_reduction <add>, %14, %cst_5 [1, 2] : vector<1x8x64xf32> to vector<1xf32>
    %16 = vector.shape_cast %15 : vector<1xf32> to vector<1x1x1xf32>
    %17 = vector.extract %16[0, 0, 0] : f32 from vector<1x1x1xf32>
    %c56_i32 = arith.constant 56 : i32
    %18 = tpu.dynamic_rotate %2 by %c56_i32 dim 1 : vector<8x64xf32>, i32 -> vector<8x64xf32>
    %19 = arith.subf %18, %2 : vector<8x64xf32>
    %20 = math.absf %19 : vector<8x64xf32>
    %c0_6 = arith.constant 0 : index
    %c0_7 = arith.constant 0 : index
    %21 = vector.load %arg4[%c0_6, %c0_7] : memref<1x64xf32, #tpu.memory_space<vmem>>, vector<1x64xf32>
    %22 = vector.broadcast %21 : vector<1x64xf32> to vector<8x64xf32>
    %23 = arith.mulf %20, %22 : vector<8x64xf32>
    %24 = vector.shape_cast %23 : vector<8x64xf32> to vector<1x8x64xf32>
    %cst_8 = arith.constant dense<0.000000e+00> : vector<1xf32>
    %25 = vector.multi_reduction <add>, %24, %cst_8 [1, 2] : vector<1x8x64xf32> to vector<1xf32>
    %26 = vector.shape_cast %25 : vector<1xf32> to vector<1x1x1xf32>
    %27 = vector.extract %26[0, 0, 0] : f32 from vector<1x1x1xf32>
    %28 = tpu.iota {dimensions = array<i32: 1>} : vector<1x3xi32>
    %c0_i32 = arith.constant 0 : i32
    %29 = vector.broadcast %c0_i32 : i32 to vector<1x3xi32>
    %30 = arith.cmpi eq, %28, %29 : vector<1x3xi32>
    %c1_i32 = arith.constant 1 : i32
    %31 = vector.broadcast %c1_i32 : i32 to vector<1x3xi32>
    %32 = arith.cmpi eq, %28, %31 : vector<1x3xi32>
    %33 = vector.broadcast %17 : f32 to vector<1x3xf32>
    %34 = vector.broadcast %27 : f32 to vector<1x3xf32>
    %35 = arith.select %32, %33, %34 : vector<1x3xi1>, vector<1x3xf32>
    %36 = vector.broadcast %7 : f32 to vector<1x3xf32>
    %37 = arith.select %30, %36, %35 : vector<1x3xi1>, vector<1x3xf32>
    %c0_9 = arith.constant 0 : index
    %c0_10 = arith.constant 0 : index
    %38 = vector.load %arg5[%c0_9, %c0_10] : memref<1x3xf32, #tpu.memory_space<vmem>>, vector<1x3xf32>
    tpu.vector_store %arg5[%c0_9, %c0_10], %37 {strides = array<i32>} : memref<1x3xf32, #tpu.memory_space<vmem>>, vector<1x3xf32>,
    return
  }
  func.func @transform_0(%arg0: i32) -> (i32, i32) {
    %c0_i32 = arith.constant 0 : i32
    %c0_i32_0 = arith.constant 0 : i32
    return %arg0, %c0_i32 : i32, i32
  }
  func.func @transform_1(%arg0: i32) -> (i32, i32) {
    %c0_i32 = arith.constant 0 : i32
    %c0_i32_0 = arith.constant 0 : i32
    return %arg0, %c0_i32 : i32, i32
  }
  func.func @transform_2(%arg0: i32) -> (i32, i32) {
    %c0_i32 = arith.constant 0 : i32
    %c0_i32_0 = arith.constant 0 : i32
    %c0_i32_1 = arith.constant 0 : i32
    return %c0_i32, %c0_i32_0 : i32, i32
  }
  func.func @transform_3(%arg0: i32) -> (i32, i32) {
    %c0_i32 = arith.constant 0 : i32
    %c0_i32_0 = arith.constant 0 : i32
    %c0_i32_1 = arith.constant 0 : i32
    return %c0_i32, %c0_i32_0 : i32, i32
  }
  func.func @transform_4(%arg0: i32) -> (i32, i32) {
    %c0_i32 = arith.constant 0 : i32
    %c0_i32_0 = arith.constant 0 : i32
    return %arg0, %c0_i32 : i32, i32
  }
}

</mosaic_0001>

<bundles_post_ra>
// kernel: get_loss.2
= control target key start
LH: loop header
LB: loop body
LE: loop exit
PB: predicated region body
PF: predicated region fallthrough
CT: control target
= control target key end

     0   :  { %s116_s19 = smov 112   ;;  %s117_s20 = smov 127   ;;  %v39_v9 = vlaneseq  ;;  %vm102_vm4 = vcmask 16384   ;;  %s170_s0 = inlined_call_operand.vmem [shape: f32[8,256], index: 0, kind: input, shape index: {}]   ;;  %s171_s1 = inlined_call_operand.vmem [shape: f32[8,256], index: 1, kind: input, shape index: {}]   ;;  %s172_s3 = inlined_call_operand.vmem [shape: f32[1,256], index: 3, kind: input, shape index: {}]   ;;  %s173_s2 = inlined_call_operand.vmem [shape: f32[1,256], index: 2, kind: input, shape index: {}]   ;;  %s174_s4 = inlined_call_operand.vmem [shape: f32[1,3], index: 4, kind: output, shape index: {}]  }
   0x1   :  { %v17_v0 = vld [vmem:[%s170_s0] sm:$0xff]  ;;  %v18_v3 = vld [vmem:[%s170_s0 + $0x8] sm:$0xff] }
   0x2   :  { %v19_v1 = vld [vmem:[%s171_s1] sm:$0xff]  ;;  %v20_v4 = vld [vmem:[%s171_s1 + $0x8] sm:$0xff]  ;;  %v155_v12 = vand.u32 127, %v39_v9 }
   0x3   :  { %v21_v2 = vsub.f32 %v17_v0, %v19_v1  ;;  %v22_v5 = vsub.f32 %v18_v3, %v20_v4  ;;  %v77_v13 = vld [vmem:[%s172_s3] sm:$0x3] }
   0x4   :  { %v48_v14 = vld [vmem:[%s173_s2] sm:$0x3]  ;;  %vm70_vm0 = vcmp.lt.s32.totalorder %v155_v12, 112  ;;  %vm41_vm1 = vcmp.lt.s32.totalorder %v155_v12, 127  ;;  %v79_v17 = vperm.slane %v77_v13, 0  ;;  %v80_v18 = vperm.slane %v77_v13, 1 }
   0x5   :  { %66 = vrot.lane.b32.xlu1 %v21_v2, %s116_s19  ;;  %35 = vrot.lane.b32.xlu0 %v21_v2, %s117_s20  ;;  %v23_v6 = vand.u32 2147483647, %v21_v2  ;;  %v24_v7 = vand.u32 2147483647, %v22_v5  ;;  %v50_v19 = vperm.slane %v48_v14, 0  ;;  %v51_v28 = vperm.slane %v48_v14, 1 }
   0x6   :  { %vm96_vm2 = vcmp.eq.s32.totalorder %v155_v12, 1  ;;  %vm95_vm3 = vcmp.eq.s32.totalorder %v155_v12, 0 }
   0x7   :  { %v25_v8 = vadd.f32 %v24_v7, %v23_v6 }
   0x9   :  { %26 = vadd.xlane.f32.xlu2 %v25_v8 }
   0xd   :  { %68 = vrot.lane.b32.xlu1 %v22_v5, %s116_s19  ;;  %37 = vrot.lane.b32.xlu0 %v22_v5, %s117_s20 }
  0x77   :  { %v67_v10 = vpop.permute.xlu1 %66  ;;  %v36_v11 = vpop.permute.xlu0 %35 }
  0x7c   :  { %v27_v39 = vpop.xlane.xlu2 %26 }
  0x7d   :  { %v28_v40 = vrot.slane %v27_v39, 4 }
  0x7f   :  { %v69_v15 = vpop.permute.xlu1 %68  ;;  %v38_v16 = vpop.permute.xlu0 %37  ;;  %v29_v41 = vadd.f32 %v28_v40, %v27_v39 }
  0x80   :  { %v71_v20 = vsel %vm70_vm0, %v67_v10, %v69_v15  ;;  %v72_v21 = vsel %vm70_vm0, %v69_v15, %v67_v10  ;;  %v42_v22 = vsel %vm41_vm1, %v36_v11, %v38_v16  ;;  %v43_v23 = vsel %vm41_vm1, %v38_v16, %v36_v11 }
  0x81   :  { %v73_v24 = vsub.f32 %v71_v20, %v21_v2  ;;  %v74_v25 = vsub.f32 %v72_v21, %v22_v5  ;;  %v44_v26 = vsub.f32 %v42_v22, %v21_v2  ;;  %v45_v27 = vsub.f32 %v43_v23, %v22_v5 }
  0x82   :  { %v30_v42 = vrot.slane %v29_v41, 2 }
  0x83   :  { %v75_v29 = vand.u32 2147483647, %v73_v24  ;;  %v76_v30 = vand.u32 2147483647, %v74_v25  ;;  %v46_v31 = vand.u32 2147483647, %v44_v26 }
  0x84   :  { %v47_v32 = vand.u32 2147483647, %v45_v27  ;;  %v31_v43 = vadd.f32 %v30_v42, %v29_v41 }
  0x85   :  { %v83_v33 = vmul.f32 %v79_v17, %v75_v29  ;;  %v84_v34 = vmul.f32 %v80_v18, %v76_v30  ;;  %v54_v35 = vmul.f32 %v50_v19, %v46_v31 }
  0x86   :  { %v55_v36 = vmul.f32 %v51_v28, %v47_v32  ;;  %v32_v44 = vrot.slane %v31_v43, 1 }
  0x87   :  { %v85_v37 = vadd.f32 %v84_v34, %v83_v33 }
  0x88   :  { %v56_v38 = vadd.f32 %v55_v36, %v54_v35  ;;  %v33_v45 = vadd.f32 %v32_v44, %v31_v43 }
  0x89   :  { %86 = vadd.xlane.f32.xlu0 %v85_v37 }
  0x8a   :  { %57 = vadd.xlane.f32.xlu2 %v56_v38  ;;  %108 = vpush %v33_v45 }
  0xbb   :  { %s109_s1 = spop %108 }
  0xbc   :  { %v100_v62 = vstv %s109_s1 }
  0xfc   :  { %v87_v46 = vpop.xlane.xlu0 %86 }
  0xfd   :  { %v88_v47 = vrot.slane %v87_v46, 4  ;;  %v58_v48 = vpop.xlane.xlu2 %57 }
  0xfe   :  { %v59_v49 = vrot.slane %v58_v48, 4 }
  0xff   :  { %v89_v50 = vadd.f32 %v88_v47, %v87_v46 }
 0x100   :  { %v60_v51 = vadd.f32 %v59_v49, %v58_v48 }
 0x101   :  { %v90_v52 = vrot.slane %v89_v50, 2 }
 0x102   :  { %v61_v53 = vrot.slane %v60_v51, 2 }
 0x103   :  { %v91_v54 = vadd.f32 %v90_v52, %v89_v50 }
 0x104   :  { %v62_v55 = vadd.f32 %v61_v53, %v60_v51 }
 0x105   :  { %v92_v56 = vrot.slane %v91_v54, 1 }
 0x106   :  { %v63_v57 = vrot.slane %v62_v55, 1 }
 0x107   :  { %v93_v58 = vadd.f32 %v92_v56, %v91_v54 }
 0x108   :  { %v64_v59 = vadd.f32 %v63_v57, %v62_v55 }
 0x10a   :  { %110 = vpush %v64_v59 }
 0x10b   :  { %112 = vpush %v93_v58 }
 0x13b   :  { %s111_s2 = spop %110 }
 0x13c   :  { %v97_v60 = vstv %s111_s2  ;;  %s113_s3 = spop %112 }
 0x13d   :  { %v98_v61 = vstv %s113_s3 }
 0x13e   :  { %v99_v63 = vsel %vm96_vm2, %v97_v60, %v98_v61 }
 0x13f   :  { %v101_v0 = vsel %vm95_vm3, %v100_v62, %v99_v63 }
 0x140   :  { %103 = vst.msk [vmem:[%s174_s4] sm:$0x1] %vm102_vm4, %v101_v0 }

// kernel: get_loss.3
= control target key start
LH: loop header
LB: loop body
LE: loop exit
PB: predicated region body
PF: predicated region fallthrough
CT: control target
= control target key end

     0   :  { %s120_s19 = smov 64   ;;  %s121_s20 = smov 1   ;;  %vm32_vm0 = vcmask 1048064   ;;  %vm21_vm1 = vcmask 523264   ;;  %v92_v46 = vlaneseq  ;;  %vm101_vm4 = vcmask 16384   ;;  %s168_s0 = inlined_call_operand.vmem [shape: f32[8,64], index: 0, kind: input, shape index: {}]   ;;  %s169_s1 = inlined_call_operand.vmem [shape: f32[8,64], index: 1, kind: input, shape index: {}]   ;;  %s170_s2 = inlined_call_operand.vmem [shape: f32[1,64], index: 2, kind: input, shape index: {}]   ;;  %s171_s3 = inlined_call_operand.vmem [shape: f32[1,64], index: 3, kind: input, shape index: {}]   ;;  %s172_s4 = inlined_call_operand.vmem [shape: f32[1,3], index: 4, kind: output, shape index: {}]  }
   0x1   :  { %v17_v0 = vld [vmem:[%s168_s0] sm:$0xff]  ;;  %s122_s21 = smov 8   ;;  %s123_s0 = smov 120  }
   0x2   :  { %v18_v1 = vld [vmem:[%s169_s1] sm:$0xff]  ;;  %s124_s1 = smov 127   ;;  %v93_v47 = vand.u32 127, %v92_v46 }
   0x3   :  { %v19_v2 = vsub.f32 %v17_v0, %v18_v1  ;;  %v118_v3 = vld [vmem:[%s170_s2] ss:$0 sm:$0xff] }
   0x4   :  { %48 = vrot.lane.b32.xlu2 %v118_v3, %s121_s20  ;;  %v119_v4 = vld [vmem:[%s171_s3] ss:$0 sm:$0xff]  ;;  %vm95_vm2 = vcmp.eq.s32.totalorder %v93_v47, 1  ;;  %vm94_vm3 = vcmp.eq.s32.totalorder %v93_v47, 0 }
   0x5   :  { %33 = vrot.lane.b32.xlu0 %v19_v2, %s120_s19  ;;  %40 = vrot.lane.b32.xlu1 %v19_v2, %s121_s20  ;;  %v20_v7 = vand.u32 2147483647, %v19_v2 }
   0x7   :  { %v22_v8 = vsel %vm21_vm1, %v20_v7, 0.0 }
   0xc   :  { %74 = vrot.lane.b32.xlu2 %v119_v4, %s122_s21 }
   0xd   :  { %66 = vrot.lane.b32.xlu1 %v19_v2, %s122_s21 }
  0x35   :  { %23 = vadd.xlane.f32.xlu2 %v22_v8 }
  0x5e   :  { %v49_v10 = vpop.permute.xlu2 %48 }
  0x66   :  { %v75_v16 = vpop.permute.xlu2 %74 }
  0x77   :  { %v34_v5 = vpop.permute.xlu0 %33  ;;  %v41_v9 = vpop.permute.xlu1 %40 }
  0x78   :  { %v35_v6 = vsel %vm32_vm0, %v34_v5, %v19_v2 }
  0x79   :  { %36 = vrot.lane.b32.xlu0 %v35_v6, %s120_s19 }
  0x7f   :  { %v67_v11 = vpop.permute.xlu1 %66 }
  0xa8   :  { %v24_v25 = vpop.xlane.xlu2 %23 }
  0xa9   :  { %v25_v26 = vrot.slane %v24_v25, 4 }
  0xab   :  { %v26_v27 = vadd.f32 %v25_v26, %v24_v25 }
  0xad   :  { %v27_v28 = vrot.slane %v26_v27, 2 }
  0xaf   :  { %v28_v29 = vadd.f32 %v27_v28, %v26_v27 }
  0xb1   :  { %v29_v30 = vrot.slane %v28_v29, 1 }
  0xb3   :  { %v30_v31 = vadd.f32 %v29_v30, %v28_v29 }
  0xb5   :  { %107 = vpush %v30_v31 }
  0xe6   :  { %s108_s2 = spop %107 }
  0xe7   :  { %v99_v50 = vstv %s108_s2 }
  0xeb   :  { %v37_v12 = vpop.permute.xlu0 %36 }
  0xec   :  { %v38_v13 = vsel %vm32_vm0, %v37_v12, %v19_v2 }
  0xed   :  { %v43_v14 = vsub.f32 %v38_v13, %v41_v9  ;;  %v69_v15 = vsub.f32 %v38_v13, %v67_v11 }
  0xef   :  { %v44_v17 = vand.u32 2147483647, %v43_v14  ;;  %v70_v18 = vand.u32 2147483647, %v69_v15 }
  0xf1   :  { %v77_v19 = vmul.f32 %v75_v16, %v70_v18  ;;  %v51_v20 = vmul.f32 %v49_v10, %v44_v17 }
  0xf3   :  { %79 = vrot.lane.b32.xlu1 %v77_v19, %s123_s0  ;;  %53 = vrot.lane.b32.xlu0 %v51_v20, %s124_s1 }
 0x165   :  { %v80_v21 = vpop.permute.xlu1 %79  ;;  %v54_v22 = vpop.permute.xlu0 %53 }
 0x166   :  { %v82_v23 = vsel %vm21_vm1, %v80_v21, 0.0  ;;  %v56_v24 = vsel %vm21_vm1, %v54_v22, 0.0 }
 0x167   :  { %83 = vadd.xlane.f32.xlu1 %v82_v23  ;;  %57 = vadd.xlane.f32.xlu0 %v56_v24 }
 0x1da   :  { %v84_v32 = vpop.xlane.xlu1 %83  ;;  %v58_v33 = vpop.xlane.xlu0 %57 }
 0x1db   :  { %v85_v34 = vrot.slane %v84_v32, 4  ;;  %v59_v35 = vrot.slane %v58_v33, 4 }
 0x1dd   :  { %v86_v36 = vadd.f32 %v85_v34, %v84_v32  ;;  %v60_v37 = vadd.f32 %v59_v35, %v58_v33 }
 0x1df   :  { %v87_v38 = vrot.slane %v86_v36, 2  ;;  %v61_v39 = vrot.slane %v60_v37, 2 }
 0x1e1   :  { %v88_v40 = vadd.f32 %v87_v38, %v86_v36  ;;  %v62_v41 = vadd.f32 %v61_v39, %v60_v37 }
 0x1e3   :  { %v63_v42 = vrot.slane %v62_v41, 1  ;;  %v89_v43 = vrot.slane %v88_v40, 1 }
 0x1e5   :  { %v64_v44 = vadd.f32 %v63_v42, %v62_v41  ;;  %v90_v45 = vadd.f32 %v89_v43, %v88_v40 }
 0x1e7   :  { %109 = vpush %v64_v44 }
 0x1e8   :  { %111 = vpush %v90_v45 }
 0x218   :  { %s110_s3 = spop %109 }
 0x219   :  { %v96_v48 = vstv %s110_s3  ;;  %s112_s26 = spop %111 }
 0x21a   :  { %v97_v49 = vstv %s112_s26 }
 0x21b   :  { %v98_v51 = vsel %vm95_vm2, %v96_v48, %v97_v49 }
 0x21c   :  { %v100_v52 = vsel %vm94_vm3, %v99_v50, %v98_v51 }
 0x21d   :  { %102 = vst.msk [vmem:[%s172_s4] sm:$0x1] %vm101_vm4, %v100_v52 }

</bundles_post_ra>
